<compile_context>
chip_gen: v6e
topology: v6e:2x2x1
jax: 0.10.0
libtpu: 0.0.40
codegen_flags: <defaults>
</compile_context>

<pallas_src>
import jax
import jax.numpy as jnp
from jax.experimental import pallas as pl
from jax.experimental.pallas import tpu as pltpu

NUM_CLASSES = 2
SEG = 128                    # one vreg of lanes
OUT_LANES = 3 * SEG          # packed output: [probs | conf | label] segments


def _pick_batch_tile(b):
    if b % 8 != 0:
        return b             # block == full dim is always legal
    tb = min(b, 32)
    while b % tb != 0:
        tb -= 8
    return tb


def _pick_spatial_tile(hw, tb, c, itemsize=2, budget_bytes=4 << 20):
    """Largest multiple-of-128 divisor of hw whose bf16 x-tile fits the budget."""
    if hw % 128 != 0:
        return hw            # unaligned spatial extent: take it whole
    tgt = budget_bytes // max(1, tb * c * itemsize)
    tgt = max(128, min(hw, (tgt // 128) * 128))
    t = tgt
    while t >= 128:
        if hw % t == 0:
            return t
        t -= 128
    return hw


def general_interface_forward(x_nchw, text, params):
    """x_nchw: (B, C, H, W) f32 (NCHW like PyTorch); text: (B, S, D) f32.

    Returns (probs (B, NUM_CLASSES) f32, confidence (B,) f32, label (B,) int32).
    """
    B, C, H, W = x_nchw.shape
    HW = H * W
    _, S, D = text.shape
    hidden = params["w_img"].shape[1]

    # bf16 at the pallas_call boundary: halves HBM bytes for the mem-bound pool.
    x_flat = x_nchw.reshape(B, C, HW).astype(jnp.bfloat16)
    t_in = text.astype(jnp.bfloat16)

    # One-time fusion of the two undersized matmuls into a single MXU pass:
    # w_img rows live at [0:C), w_txt rows at [SEG:SEG+D) of a zero-padded
    # (2*SEG, hidden) matrix, so the in-kernel "concat" of the two pools is
    # just two vreg-aligned masked stores into a zeroed scratch vector.
    w_fuse = jnp.zeros((2 * SEG, hidden), jnp.float32)
    w_fuse = w_fuse.at[0:C, :].set(params["w_img"].astype(jnp.float32))
    w_fuse = w_fuse.at[SEG:SEG + D, :].set(params["w_txt"].astype(jnp.float32))
    b_fuse = params["b_fuse"].astype(jnp.float32)
    w_cls = params["w_cls"].astype(jnp.float32)
    b_cls = params["b_cls"].astype(jnp.float32)

    tb = _pick_batch_tile(B)
    thw = _pick_spatial_tile(HW, tb, C)
    grid = (B // tb, HW // thw)          # (parallel batch, arbitrary reduction)

    inv_hw = 1.0 / float(HW)
    inv_s = 1.0 / float(S)

    def kernel(x_ref, t_ref, wf_ref, bf_ref, wc_ref, bc_ref,
               out_ref, acc_ref, fused_ref):
        k = pl.program_id(1)

        @pl.when(k == 0)
        def _init():
            acc_ref[...] = jnp.zeros_like(acc_ref)

        # ---- synthetic wrapped-model image pooling: f32 spatial-sum accumulation
        acc_ref[...] += jnp.sum(x_ref[...].astype(jnp.float32), axis=-1)  # (tb, C)

        @pl.when(k == pl.num_programs(1) - 1)
        def _finalize():
            img_pool = acc_ref[...] * inv_hw                                   # (tb, C)
            txt_pool = jnp.sum(t_ref[...].astype(jnp.float32), axis=1) * inv_s  # (tb, D)

            # Pack both pools into one zero-padded vector (vreg-aligned segments)
            # so a single MXU matmul replaces two tiny ones.
            fused_ref[...] = jnp.zeros_like(fused_ref)
            fused_ref[:, 0:C] = img_pool
            fused_ref[:, SEG:SEG + D] = txt_pool

            h = jnp.dot(fused_ref[...], wf_ref[...],
                        preferred_element_type=jnp.float32) + bf_ref[...]
            h = jnp.maximum(h, 0.0)                                            # ReLU fusion
            scores = jnp.dot(h, wc_ref[...],
                             preferred_element_type=jnp.float32) + bc_ref[...]  # (tb, 2)

            # ---- classify() head: softmax(dim=1) then max(dim=1) ----
            m = jnp.max(scores, axis=1, keepdims=True)
            e = jnp.exp(scores - m)
            denom = jnp.sum(e, axis=1, keepdims=True)
            probs = e * pl.reciprocal(denom, approx=True)      # EUP reciprocal
            conf = jnp.max(probs, axis=1, keepdims=True)
            # argmax from scores (robust: no float equality on post-exp values);
            # first maximal index, matching torch.max tie-breaking.
            cls_ids = jax.lax.broadcasted_iota(jnp.int32, scores.shape, 1)
            label = jnp.min(jnp.where(scores == m, cls_ids, NUM_CLASSES),
                            axis=1, keepdims=True).astype(jnp.float32)

            # Lane-dense packed output slab: probs @ lane 0, conf @ lane SEG,
            # label @ lane 2*SEG (all vreg-aligned segment offsets).
            out_ref[...] = jnp.zeros_like(out_ref)
            out_ref[:, 0:NUM_CLASSES] = probs
            out_ref[:, SEG:SEG + 1] = conf
            out_ref[:, 2 * SEG:2 * SEG + 1] = label

    cost = pl.CostEstimate(
        flops=(2 * B * C * HW + 2 * B * S * D
               + 2 * B * (2 * SEG) * hidden + 2 * B * hidden * NUM_CLASSES),
        transcendentals=B * (NUM_CLASSES + 1),
        bytes_accessed=(x_flat.size * 2 + t_in.size * 2
                        + (w_fuse.size + b_fuse.size + w_cls.size + b_cls.size) * 4
                        + B * OUT_LANES * 4),
    )

    packed = pl.pallas_call(
        kernel,
        out_shape=jax.ShapeDtypeStruct((B, OUT_LANES), jnp.float32),
        grid=grid,
        in_specs=[
            pl.BlockSpec((tb, C, thw), lambda i, k: (i, 0, k)),    # image (pipelined)
            pl.BlockSpec((tb, S, D), lambda i, k: (i, 0, 0)),      # text per batch tile
            pl.BlockSpec((2 * SEG, hidden), lambda i, k: (0, 0)),  # fused weights
            pl.BlockSpec((1, hidden), lambda i, k: (0, 0)),        # fusion bias
            pl.BlockSpec((hidden, NUM_CLASSES), lambda i, k: (0, 0)),
            pl.BlockSpec((1, NUM_CLASSES), lambda i, k: (0, 0)),
        ],
        out_specs=pl.BlockSpec((tb, OUT_LANES), lambda i, k: (i, 0)),
        scratch_shapes=[
            pltpu.VMEM((tb, C), jnp.float32),        # image-pool accumulator
            pltpu.VMEM((tb, 2 * SEG), jnp.float32),  # packed fusion input
        ],
        compiler_params=pltpu.CompilerParams(
            dimension_semantics=("parallel", "arbitrary"),  # batch across TCs on v7x
            vmem_limit_bytes=32 * 1024 * 1024),
        cost_estimate=cost,
    )(x_flat, t_in, w_fuse, b_fuse, w_cls, b_cls)

    probs = packed[:, 0:NUM_CLASSES]
    conf = packed[:, SEG]
    label = packed[:, 2 * SEG].astype(jnp.int32)
    return probs, conf, label


def make_params(key, C, D, hidden):
    k1, k2, k3, k4, k5 = jax.random.split(key, 5)
    return {
        "w_img": jax.random.normal(k1, (C, hidden), jnp.float32) * 0.1,
        "w_txt": jax.random.normal(k2, (D, hidden), jnp.float32) * 0.1,
        "b_fuse": jax.random.normal(k3, (1, hidden), jnp.float32) * 0.01,
        "w_cls": jax.random.normal(k4, (hidden, NUM_CLASSES), jnp.float32) * 0.1,
        "b_cls": jax.random.normal(k5, (1, NUM_CLASSES), jnp.float32) * 0.01,
    }


if __name__ == "__main__":
    B, C, H, W = 2, 4, 16, 16
    S, D, HIDDEN = 8, 32, 32

    key = jax.random.PRNGKey(0)
    kx, kt, kp = jax.random.split(key, 3)
    image = jax.random.normal(kx, (B, C, H, W), jnp.float32)   # NCHW like PyTorch
    text = jax.random.normal(kt, (B, S, D), jnp.float32)
    params = make_params(kp, C, D, HIDDEN)

    probs, conf, label = general_interface_forward(image, text, params)
    jax.block_until_ready((probs, conf, label))

    # Pure-JAX reference using the same bf16-cast inputs the kernel sees.
    xr = image.reshape(B, C, H * W).astype(jnp.bfloat16).astype(jnp.float32)
    tr = text.astype(jnp.bfloat16).astype(jnp.float32)
    img_pool = jnp.mean(xr, axis=-1)
    txt_pool = jnp.mean(tr, axis=1)
    hid = jnp.maximum(img_pool @ params["w_img"] + txt_pool @ params["w_txt"]
                      + params["b_fuse"], 0.0)
    ref_scores = hid @ params["w_cls"] + params["b_cls"]
    ref_probs = jax.nn.softmax(ref_scores, axis=1)
    ref_conf = jnp.max(ref_probs, axis=1)

    # Sanity: softmax rows ~sum to 1 (approx EUP reciprocal), match reference,
    # and label is consistent with the kernel's own probabilities.
    assert jnp.allclose(jnp.sum(probs, axis=1), 1.0, atol=5e-3)
    assert jnp.allclose(probs, ref_probs, atol=1e-2)
    assert jnp.allclose(conf, ref_conf, atol=1e-2)
    assert jnp.array_equal(label, jnp.argmax(probs, axis=1).astype(jnp.int32))
    print("KERNEL_OK")
</pallas_src>

<mosaic_0001>
module attributes {stable_mosaic.version = 11 : i64} {
  func.func @kernel(%arg0: i32, %arg1: i32, %arg2: memref<2x4x256xbf16, #tpu.memory_space<vmem>>, %arg3: memref<2x8x32xbf16, #tpu.memory_space<vmem>>, %arg4: memref<256x32xf32, #tpu.memory_space<vmem>>, %arg5: memref<1x32xf32, #tpu.memory_space<vmem>>, %arg6: memref<32x2xf32, #tpu.memory_space<vmem>>, %arg7: memref<1x2xf32, #tpu.memory_space<vmem>>, %arg8: memref<2x384xf32, #tpu.memory_space<vmem>>, %arg9: memref<2x4xf32, #tpu.memory_space<vmem>>, %arg10: memref<2x256xf32, #tpu.memory_space<vmem>>) attributes {dimension_semantics = [#tpu.dimension_semantics<parallel>, #tpu.dimension_semantics<arbitrary>], iteration_bounds = array<i64: 1, 1>, scalar_prefetch = 0 : i64, scratch_operands = 2 : i64, tpu.core_type = #tpu.core_type<tc>, window_params = [{transform_indices = @transform_0, window_bounds = array<i64: 2, 4, 256>}, {transform_indices = @transform_1, window_bounds = array<i64: 2, 8, 32>}, {pipeline_mode = #tpu.pipeline_mode<synchronous>, transform_indices = @transform_2, window_bounds = array<i64: 256, 32>}, {pipeline_mode = #tpu.pipeline_mode<synchronous>, transform_indices = @transform_3, window_bounds = array<i64: 1, 32>}, {pipeline_mode = #tpu.pipeline_mode<synchronous>, transform_indices = @transform_4, window_bounds = array<i64: 32, 2>}, {pipeline_mode = #tpu.pipeline_mode<synchronous>, transform_indices = @transform_5, window_bounds = array<i64: 1, 2>}, {transform_indices = @transform_6, window_bounds = array<i64: 2, 384>}]} {
    %c0_i32 = arith.constant 0 : i32
    %0 = arith.cmpi eq, %arg1, %c0_i32 : i32
    %1 = arith.extui %0 : i1 to i32
    %c0_i32_0 = arith.constant 0 : i32
    %2 = arith.cmpi ne, %1, %c0_i32_0 : i32
    scf.if %2 {
      %cst_9 = arith.constant 0.000000e+00 : f32
      %12 = vector.broadcast %cst_9 : f32 to vector<2x4xf32>
      %c0_10 = arith.constant 0 : index
      %c0_11 = arith.constant 0 : index
      %13 = vector.load %arg9[%c0_10, %c0_11] : memref<2x4xf32, #tpu.memory_space<vmem>>, vector<2x4xf32>
      tpu.vector_store %arg9[%c0_10, %c0_11], %12 {strides = array<i32>} : memref<2x4xf32, #tpu.memory_space<vmem>>, vector<2x4xf32>,
    } else {
    }
    %c0 = arith.constant 0 : index
    %c0_1 = arith.constant 0 : index
    %3 = vector.load %arg9[%c0, %c0_1] : memref<2x4xf32, #tpu.memory_space<vmem>>, vector<2x4xf32>
    %c0_2 = arith.constant 0 : index
    %c0_3 = arith.constant 0 : index
    %c0_4 = arith.constant 0 : index
    %4 = vector.load %arg2[%c0_2, %c0_3, %c0_4] : memref<2x4x256xbf16, #tpu.memory_space<vmem>>, vector<2x4x256xbf16>
    %5 = arith.extf %4 : vector<2x4x256xbf16> to vector<2x4x256xf32>
    %cst = arith.constant dense<0.000000e+00> : vector<2x4xf32>
    %6 = vector.multi_reduction <add>, %5, %cst [2] : vector<2x4x256xf32> to vector<2x4xf32>
    %7 = arith.addf %3, %6 : vector<2x4xf32>
    %c0_5 = arith.constant 0 : index
    %c0_6 = arith.constant 0 : index
    %8 = vector.load %arg9[%c0_5, %c0_6] : memref<2x4xf32, #tpu.memory_space<vmem>>, vector<2x4xf32>
    tpu.vector_store %arg9[%c0_5, %c0_6], %7 {strides = array<i32>} : memref<2x4xf32, #tpu.memory_space<vmem>>, vector<2x4xf32>,
    %c0_i32_7 = arith.constant 0 : i32
    %9 = arith.cmpi eq, %arg1, %c0_i32_7 : i32
    %10 = arith.extui %9 : i1 to i32
    %c0_i32_8 = arith.constant 0 : i32
    %11 = arith.cmpi ne, %10, %c0_i32_8 : i32
    scf.if %11 {
      %c0_9 = arith.constant 0 : index
      %c0_10 = arith.constant 0 : index
      %12 = vector.load %arg9[%c0_9, %c0_10] : memref<2x4xf32, #tpu.memory_space<vmem>>, vector<2x4xf32>
      %cst_11 = arith.constant 3.906250e-03 : f32
      %13 = vector.broadcast %cst_11 : f32 to vector<2x4xf32>
      %14 = arith.mulf %12, %13 : vector<2x4xf32>
      %c0_12 = arith.constant 0 : index
      %c0_13 = arith.constant 0 : index
      %c0_14 = arith.constant 0 : index
      %15 = vector.load %arg3[%c0_12, %c0_13, %c0_14] : memref<2x8x32xbf16, #tpu.memory_space<vmem>>, vector<2x8x32xbf16>
      %16 = arith.extf %15 : vector<2x8x32xbf16> to vector<2x8x32xf32>
      %cst_15 = arith.constant dense<0.000000e+00> : vector<2x32xf32>
      %17 = vector.multi_reduction <add>, %16, %cst_15 [1] : vector<2x8x32xf32> to vector<2x32xf32>
      %cst_16 = arith.constant 1.250000e-01 : f32
      %18 = vector.broadcast %cst_16 : f32 to vector<2x32xf32>
      %19 = arith.mulf %17, %18 : vector<2x32xf32>
      %cst_17 = arith.constant 0.000000e+00 : f32
      %20 = vector.broadcast %cst_17 : f32 to vector<2x256xf32>
      %c0_18 = arith.constant 0 : index
      %c0_19 = arith.constant 0 : index
      %21 = vector.load %arg10[%c0_18, %c0_19] : memref<2x256xf32, #tpu.memory_space<vmem>>, vector<2x256xf32>
      tpu.vector_store %arg10[%c0_18, %c0_19], %20 {strides = array<i32>} : memref<2x256xf32, #tpu.memory_space<vmem>>, vector<2x256xf32>,
      %c0_20 = arith.constant 0 : index
      %c0_21 = arith.constant 0 : index
      %22 = vector.load %arg10[%c0_20, %c0_21] : memref<2x256xf32, #tpu.memory_space<vmem>>, vector<2x4xf32>
      tpu.vector_store %arg10[%c0_20, %c0_21], %14 {strides = array<i32>} : memref<2x256xf32, #tpu.memory_space<vmem>>, vector<2x4xf32>,
      %c0_22 = arith.constant 0 : index
      %c128 = arith.constant 128 : index
      %23 = vector.load %arg10[%c0_22, %c128] : memref<2x256xf32, #tpu.memory_space<vmem>>, vector<2x32xf32>
      tpu.vector_store %arg10[%c0_22, %c128], %19 {strides = array<i32>} : memref<2x256xf32, #tpu.memory_space<vmem>>, vector<2x32xf32>,
      %c0_23 = arith.constant 0 : index
      %c0_24 = arith.constant 0 : index
      %24 = vector.load %arg10[%c0_23, %c0_24] : memref<2x256xf32, #tpu.memory_space<vmem>>, vector<2x256xf32>
      %c0_25 = arith.constant 0 : index
      %c0_26 = arith.constant 0 : index
      %25 = vector.load %arg4[%c0_25, %c0_26] : memref<256x32xf32, #tpu.memory_space<vmem>>, vector<256x32xf32>
      %cst_27 = arith.constant dense<0.000000e+00> : vector<2x32xf32>
      %26 = tpu.matmul %24, %25, %cst_27 {dimension_numbers = #tpu.dot_dimension_numbers<[1], [0], [0], [1], [0, 0, 1, 1], [], []>} : vector<2x256xf32>, vector<256x32xf32>, vector<2x32xf32> -> vector<2x32xf32>
      %c0_28 = arith.constant 0 : index
      %c0_29 = arith.constant 0 : index
      %27 = vector.load %arg5[%c0_28, %c0_29] : memref<1x32xf32, #tpu.memory_space<vmem>>, vector<1x32xf32>
      %28 = vector.broadcast %27 : vector<1x32xf32> to vector<2x32xf32>
      %29 = arith.addf %26, %28 : vector<2x32xf32>
      %cst_30 = arith.constant 0.000000e+00 : f32
      %30 = vector.broadcast %cst_30 : f32 to vector<2x32xf32>
      %31 = arith.maximumf %29, %30 : vector<2x32xf32>
      %c0_31 = arith.constant 0 : index
      %c0_32 = arith.constant 0 : index
      %32 = vector.load %arg6[%c0_31, %c0_32] : memref<32x2xf32, #tpu.memory_space<vmem>>, vector<32x2xf32>
      %cst_33 = arith.constant dense<0.000000e+00> : vector<2x2xf32>
      %33 = tpu.matmul %31, %32, %cst_33 {dimension_numbers = #tpu.dot_dimension_numbers<[1], [0], [0], [1], [0, 0, 1, 1], [], []>} : vector<2x32xf32>, vector<32x2xf32>, vector<2x2xf32> -> vector<2x2xf32>
      %c0_34 = arith.constant 0 : index
      %c0_35 = arith.constant 0 : index
      %34 = vector.load %arg7[%c0_34, %c0_35] : memref<1x2xf32, #tpu.memory_space<vmem>>, vector<1x2xf32>
      %35 = vector.broadcast %34 : vector<1x2xf32> to vector<2x2xf32>
      %36 = arith.addf %33, %35 : vector<2x2xf32>
      %cst_36 = arith.constant dense<0xFF800000> : vector<2xf32>
      %37 = vector.multi_reduction <maximumf>, %36, %cst_36 [1] : vector<2x2xf32> to vector<2xf32>
      %38 = vector.shape_cast %37 : vector<2xf32> to vector<2x1xf32>
      %39 = vector.broadcast %38 : vector<2x1xf32> to vector<2x2xf32>
      %40 = arith.subf %36, %39 : vector<2x2xf32>
      %41 = math.exp %40 : vector<2x2xf32>
      %cst_37 = arith.constant dense<0.000000e+00> : vector<2xf32>
      %42 = vector.multi_reduction <add>, %41, %cst_37 [1] : vector<2x2xf32> to vector<2xf32>
      %43 = vector.shape_cast %42 : vector<2xf32> to vector<2x1xf32>
      %44 = tpu.reciprocal %43 {approx = true} : vector<2x1xf32> -> vector<2x1xf32>
      %45 = vector.broadcast %44 : vector<2x1xf32> to vector<2x2xf32>
      %46 = arith.mulf %41, %45 : vector<2x2xf32>
      %cst_38 = arith.constant dense<0xFF800000> : vector<2xf32>
      %47 = vector.multi_reduction <maximumf>, %46, %cst_38 [1] : vector<2x2xf32> to vector<2xf32>
      %48 = vector.shape_cast %47 : vector<2xf32> to vector<2x1xf32>
      %49 = tpu.iota {dimensions = array<i32: 1>} : vector<2x2xi32>
      %50 = vector.broadcast %38 : vector<2x1xf32> to vector<2x2xf32>
      %51 = arith.cmpf oeq, %36, %50 : vector<2x2xf32>
      %c2_i32 = arith.constant 2 : i32
      %52 = vector.broadcast %c2_i32 : i32 to vector<2x2xi32>
      %53 = arith.select %51, %49, %52 : vector<2x2xi1>, vector<2x2xi32>
      %cst_39 = arith.constant dense<2147483647> : vector<2xi32>
      %54 = vector.multi_reduction <minsi>, %53, %cst_39 [1] : vector<2x2xi32> to vector<2xi32>
      %55 = vector.shape_cast %54 : vector<2xi32> to vector<2x1xi32>
      %56 = arith.sitofp %55 : vector<2x1xi32> to vector<2x1xf32>
      %cst_40 = arith.constant 0.000000e+00 : f32
      %57 = vector.broadcast %cst_40 : f32 to vector<2x384xf32>
      %c0_41 = arith.constant 0 : index
      %c0_42 = arith.constant 0 : index
      %58 = vector.load %arg8[%c0_41, %c0_42] : memref<2x384xf32, #tpu.memory_space<vmem>>, vector<2x384xf32>
      tpu.vector_store %arg8[%c0_41, %c0_42], %57 {strides = array<i32>} : memref<2x384xf32, #tpu.memory_space<vmem>>, vector<2x384xf32>,
      %c0_43 = arith.constant 0 : index
      %c0_44 = arith.constant 0 : index
      %59 = vector.load %arg8[%c0_43, %c0_44] : memref<2x384xf32, #tpu.memory_space<vmem>>, vector<2x2xf32>
      tpu.vector_store %arg8[%c0_43, %c0_44], %46 {strides = array<i32>} : memref<2x384xf32, #tpu.memory_space<vmem>>, vector<2x2xf32>,
      %c0_45 = arith.constant 0 : index
      %c128_46 = arith.constant 128 : index
      %60 = vector.load %arg8[%c0_45, %c128_46] : memref<2x384xf32, #tpu.memory_space<vmem>>, vector<2x1xf32>
      tpu.vector_store %arg8[%c0_45, %c128_46], %48 {strides = array<i32>} : memref<2x384xf32, #tpu.memory_space<vmem>>, vector<2x1xf32>,
      %c0_47 = arith.constant 0 : index
      %c256 = arith.constant 256 : index
      %61 = vector.load %arg8[%c0_47, %c256] : memref<2x384xf32, #tpu.memory_space<vmem>>, vector<2x1xf32>
      tpu.vector_store %arg8[%c0_47, %c256], %56 {strides = array<i32>} : memref<2x384xf32, #tpu.memory_space<vmem>>, vector<2x1xf32>,
    } else {
    }
    return
  }
  func.func @transform_0(%arg0: i32, %arg1: i32) -> (i32, i32, i32) {
    %c0_i32 = arith.constant 0 : i32
    %c0_i32_0 = arith.constant 0 : i32
    return %arg0, %c0_i32, %arg1 : i32, i32, i32
  }
  func.func @transform_1(%arg0: i32, %arg1: i32) -> (i32, i32, i32) {
    %c0_i32 = arith.constant 0 : i32
    %c0_i32_0 = arith.constant 0 : i32
    %c0_i32_1 = arith.constant 0 : i32
    return %arg0, %c0_i32, %c0_i32_0 : i32, i32, i32
  }
  func.func @transform_2(%arg0: i32, %arg1: i32) -> (i32, i32) {
    %c0_i32 = arith.constant 0 : i32
    %c0_i32_0 = arith.constant 0 : i32
    %c0_i32_1 = arith.constant 0 : i32
    return %c0_i32, %c0_i32_0 : i32, i32
  }
  func.func @transform_3(%arg0: i32, %arg1: i32) -> (i32, i32) {
    %c0_i32 = arith.constant 0 : i32
    %c0_i32_0 = arith.constant 0 : i32
    %c0_i32_1 = arith.constant 0 : i32
    return %c0_i32, %c0_i32_0 : i32, i32
  }
  func.func @transform_4(%arg0: i32, %arg1: i32) -> (i32, i32) {
    %c0_i32 = arith.constant 0 : i32
    %c0_i32_0 = arith.constant 0 : i32
    %c0_i32_1 = arith.constant 0 : i32
    return %c0_i32, %c0_i32_0 : i32, i32
  }
  func.func @transform_5(%arg0: i32, %arg1: i32) -> (i32, i32) {
    %c0_i32 = arith.constant 0 : i32
    %c0_i32_0 = arith.constant 0 : i32
    %c0_i32_1 = arith.constant 0 : i32
    return %c0_i32, %c0_i32_0 : i32, i32
  }
  func.func @transform_6(%arg0: i32, %arg1: i32) -> (i32, i32) {
    %c0_i32 = arith.constant 0 : i32
    %c0_i32_0 = arith.constant 0 : i32
    return %arg0, %c0_i32 : i32, i32
  }
}

</mosaic_0001>

<bundles_post_ra>
// kernel: tpu_custom_call.1
= control target key start
LH: loop header
LB: loop body
LE: loop exit
PB: predicated region body
PF: predicated region fallthrough
CT: control target
= control target key end

     0   :  { %vm41_vm0 = vcmask 1043456   ;;  %vm79_vm1 = vcmask 261120   ;;  %s673_s0 = inlined_call_operand.vmem [shape: bf16[2,4,256], index: 0, kind: input, shape index: {}]   ;;  %s674_s1 = inlined_call_operand.vmem [shape: bf16[2,8,32], index: 1, kind: input, shape index: {}]   ;;  %s675_s2 = inlined_call_operand.vmem [shape: f32[256,32], index: 2, kind: input, shape index: {}]   ;;  %s676_s3 = inlined_call_operand.vmem [shape: f32[1,32], index: 3, kind: input, shape index: {}]   ;;  %s677_s4 = inlined_call_operand.vmem [shape: f32[32,2], index: 4, kind: input, shape index: {}]   ;;  %s678_s5 = inlined_call_operand.vmem [shape: f32[1,2], index: 5, kind: input, shape index: {}]   ;;  %s679_s6 = inlined_call_operand.hbm [shape: f32[2,384], index: 6, kind: output, shape index: {}]  }
   0x1   :  { %v392_v0 = vld [vmem:[%s673_s0] sm:$0xff]   ;;  %v161_v1 = vld [vmem:[%s675_s2 + $0xf8] sm:$0xff] }
   0x2   :  { %v145_v2 = vld [vmem:[%s675_s2 + $0x78] sm:$0xff]  ;;  %v393_v3 = vunpack.c.l.bf16 %v392_v0  ;;  %v394_v4 = vunpack.c.h.bf16 %v392_v0  ;;  %399 = vmatprep.subr.mxu0 %v161_v1  ;;  %v396_v5 = vld [vmem:[%s674_s1] sm:$0xff]  }
   0x3   :  { %11 = vsyncpa [#allocation5], 0  ;;  %400 = vmatpush3.msra.mxu0 %v145_v2  ;;  %v397_v6 = vunpack.c.l.bf16 %v396_v5  ;;  %v398_v7 = vunpack.c.h.bf16 %v396_v5  ;;  %v480_v21 = vmov 1983009808   ;;  %v54_v24 = vlaneseq  ;;  %v160_v38 = vld [vmem:[%s675_s2 + $0xf0] sm:$0xff]  ;;  %v159_v41 = vld [vmem:[%s675_s2 + $0xe8] sm:$0xff] }
   0x4   :  { %v37_v8 = vcombine.high %v393_v3, %v393_v3  ;;  %v42_v9 = vsel %vm41_vm0, %v393_v3, 0.0  ;;  %v38_v10 = vcombine.high %v394_v4, %v394_v4  ;;  %v47_v11 = vsel %vm41_vm0, %v394_v4, 0.0  ;;  %401 = vmatprep.subr.mxu0 %v160_v38  ;;  %v144_v40 = vld [vmem:[%s675_s2 + $0x70] sm:$0xff]  ;;  %v143_v42 = vld [vmem:[%s675_s2 + $0x68] sm:$0xff]  ;;  %v158_v46 = vld [vmem:[%s675_s2 + $0xe0] sm:$0xff] }
   0x5   :  { %v80_v12 = vsel %vm79_vm1, %v397_v6, 0.0  ;;  %v87_v13 = vsel %vm79_vm1, %v398_v7, 0.0  ;;  %v101_v22 = vunpack.c.l.s4 %v480_v21  ;;  %v538_v30 = vshrl.u32 %v54_v24, 7  ;;  %402 = vmatpush3.msra.mxu0 %v144_v40  ;;  %v142_v47 = vld [vmem:[%s675_s2 + $0x60] sm:$0xff]  ;;  %v157_v49 = vld [vmem:[%s675_s2 + $0xd8] sm:$0xff]  ;;  %v156_v53 = vld [vmem:[%s675_s2 + $0xd0] sm:$0xff] }
   0x6   :  { %v43_v14 = vsel %vm41_vm0, %v37_v8, 0.0  ;;  %v48_v15 = vsel %vm41_vm0, %v38_v10, 0.0  ;;  %v81_v16 = vrot.slane %v80_v12, 4  ;;  %v88_v17 = vrot.slane %v87_v13, 4  ;;  %403 = vmatprep.subr.mxu0 %v159_v41  ;;  %v141_v51 = vld [vmem:[%s675_s2 + $0x58] sm:$0xff]  ;;  %v140_v55 = vld [vmem:[%s675_s2 + $0x50] sm:$0xff] }
   0x7   :  { %v44_v18 = vadd.f32 %v43_v14, %v42_v9  ;;  %v49_v23 = vadd.f32 %v48_v15, %v47_v11  ;;  %v102_v29 = vunpack.c.0.s8 %v101_v22  ;;  %vm28_vm2 = vcmask 25600   ;;  %404 = vmatpush3.msra.mxu0 %v143_v42  ;;  %v155_v56 = vld [vmem:[%s675_s2 + $0xc8] sm:$0xff]  ;;  %v154_v58 = vld [vmem:[%s675_s2 + $0xc0] sm:$0xff]  ;;  %v153_v60 = vld [vmem:[%s675_s2 + $0xb8] sm:$0xff] }
   0x8   :  { %v82_v19 = vadd.f32 %v81_v16, %v80_v12  ;;  %v89_v20 = vadd.f32 %v88_v17, %v87_v13  ;;  %v481_v39 = vmov 0.0   ;;  %vm120_vm3 = vcmask 1043459   ;;  %405 = vmatprep.subr.mxu0 %v158_v46  ;;  %v139_v57 = vld [vmem:[%s675_s2 + $0x48] sm:$0xff]  ;;  %v138_v59 = vld [vmem:[%s675_s2 + $0x40] sm:$0xff]  ;;  %v137_v61 = vld [vmem:[%s675_s2 + $0x38] sm:$0xff] }
   0x9   :  { %45 = vadd.xlane.f32.xlu0 %v44_v18  ;;  %v105_v35 = vsub.s32 %v102_v29, %v538_v30  ;;  %29 = vst.msk [vmem:[#allocation2] sm:$0x3] %vm28_vm2, %v481_v39  ;;  %96 = vst [vmem:[#allocation3] sm:$0xf] %v481_v39  ;;  %439 = vmatprep.subr.mxu1 %v481_v39  ;;  %vm64_vm4 = vcmask 1041409   ;;  %vm122_vm5 = vcmask 1045509  }
   0xa   :  { %v83_v25 = vrot.slane %v82_v19, 2  ;;  %v90_v26 = vrot.slane %v89_v20, 2  ;;  %368 = vst [vmem:[#allocation4] sm:$0x3f] %v481_v39  ;;  %vm124_vm6 = vcmask 1047559   ;;  %406 = vmatpush3.msra.mxu0 %v142_v47  ;;  %vm127_vm7 = vcmask 254976  }
   0xb   :  { %407 = vmatprep.subr.mxu0 %v157_v49  ;;  %v152_v62 = vld [vmem:[%s675_s2 + $0xb0] sm:$0xff]  ;;  %v151_v0 = vld [vmem:[%s675_s2 + $0xa8] sm:$0xff]  ;;  %v150_v2 = vld [vmem:[%s675_s2 + $0xa0] sm:$0xff]  ;;  %v55_v12 = vand.u32 127, %v54_v24  ;;  %vm482_vm8 = vmmov 0   ;;  %vm335_vm9 = vcmask 9216  }
   0xc   :  { %v84_v27 = vadd.f32 %v83_v25, %v82_v19  ;;  %v91_v28 = vadd.f32 %v90_v26, %v89_v20  ;;  %408 = vmatpush3.msra.mxu0 %v141_v51  ;;  %v136_v63 = vld [vmem:[%s675_s2 + $0x30] sm:$0xff]  ;;  %v135_v1 = vld [vmem:[%s675_s2 + $0x28] sm:$0xff]  ;;  %v134_v3 = vld [vmem:[%s675_s2 + $0x20] sm:$0xff]  ;;  %447 = vmatprep.mubr.msk.f32.mxu1 %vm482_vm8, %v481_v39  ;;  %vm370_vm12 = vcmask 1024  }
   0xd   :  { %50 = vadd.xlane.f32.xlu0 %v49_v23  ;;  %409 = vmatprep.subr.mxu0 %v156_v53  ;;  %v149_v4 = vld [vmem:[%s675_s2 + $0x98] sm:$0xff]  ;;  %v148_v6 = vld [vmem:[%s675_s2 + $0x90] sm:$0xff]  ;;  %v147_v8 = vld [vmem:[%s675_s2 + $0x88] sm:$0xff]  ;;  %v58_v14 = vsub.s32 %v55_v12, %v538_v30 }
   0xe   :  { %v85_v31 = vrot.slane %v84_v27, 1  ;;  %v92_v32 = vrot.slane %v91_v28, 1  ;;  %410 = vmatpush3.msra.mxu0 %v140_v55  ;;  %v133_v5 = vld [vmem:[%s675_s2 + $0x18] sm:$0xff]  ;;  %v132_v7 = vld [vmem:[%s675_s2 + $0x10] sm:$0xff]  ;;  %v131_v9 = vld [vmem:[%s675_s2 + $0x8] sm:$0xff] }
   0xf   :  { %411 = vmatprep.subr.mxu0 %v155_v56  ;;  %v146_v10 = vld [vmem:[%s675_s2 + $0x80] sm:$0xff]  ;;  %v254_v24 = vld [vmem:[%s677_s4 + $0x18] sm:$0xff]  ;;  %v253_v26 = vld [vmem:[%s677_s4 + $0x10] sm:$0xff] }
  0x10   :  { %v86_v33 = vadd.f32 %v85_v31, %v84_v27  ;;  %v93_v34 = vadd.f32 %v92_v32, %v91_v28  ;;  %412 = vmatpush3.msra.mxu0 %v139_v57  ;;  %v130_v11 = vld [vmem:[%s675_s2] sm:$0xff]  ;;  %440 = vmatpush3.msra.mxu1 %v254_v24  ;;  %v252_v27 = vld [vmem:[%s677_s4 + $0x8] sm:$0xff] }
  0x11   :  { %413 = vmatprep.subr.mxu0 %v154_v58  ;;  %v30_v17 = vld [vmem:[#allocation2] sm:$0x3]  ;;  %441 = vmatprep.subr.mxu1 %v481_v39 }
  0x12   :  { %v94_v36 = vmul.f32 0.125, %v86_v33  ;;  %v95_v37 = vmul.f32 0.125, %v93_v34  ;;  %414 = vmatpush3.msra.mxu0 %v138_v59  ;;  %442 = vmatpush3.msra.mxu1 %v253_v26  ;;  %v251_v28 = vld [vmem:[%s677_s4] sm:$0xff] }
  0x13   :  { %415 = vmatprep.subr.mxu0 %v153_v60  ;;  %443 = vmatprep.subr.mxu1 %v481_v39  ;;  %v387_v30 = vld [vmem:[%s676_s3] ss:$0 sm:$0xff]  ;;  %s483_s3 = smov [#allocation4]  }
  0x14   :  { %v106_v43 = vrot.slane %v94_v36, %v105_v35  ;;  %v113_v44 = vrot.slane %v95_v37, %v105_v35  ;;  %416 = vmatpush3.msra.mxu0 %v137_v61  ;;  %444 = vmatpush3.msra.mxu1 %v252_v27  ;;  %v389_v35 = vld [vmem:[%s678_s5] ss:$0 sm:$0xff]  ;;  %s379_s4 = sshll.u32 %s483_s3, 4  ;;  %s380_s4 = int_to_ptr.vmem [resolvable:$true] %s379_s4 }
  0x15   :  { %417 = vmatprep.subr.mxu0 %v152_v62  ;;  %445 = vmatprep.subr.mxu1 %v481_v39  ;;  %s458_s5 = scalar_lea.vmem %s380_s4, 96  ;;  %p463_p1 = scmp.lt.s32.totalorder %s380_s4, %s380_s4 }
  0x16   :  { %v118_v45 = vrot.slane %v113_v44, 7  ;;  %418 = vmatpush3.msra.mxu0 %v136_v63  ;;  %446 = vmatpush3.msra.mxu1 %v251_v28  ;;  %p459_p0 = scmp.ne.s32.totalorder %s380_s4, %s458_s5  ;;  %p464_p2 = scmp.lt.s32.totalorder %s458_s5, %s458_s5 }
  0x17   :  { %419 = vmatprep.subr.mxu0 %v151_v0 }
  0x18   :  { %v119_v48 = vsel %vm64_vm4, %v118_v45, %v106_v43  ;;  %420 = vmatpush3.msra.mxu0 %v135_v1  ;;  %p465_p3 = por %p464_p2, %p463_p1 }
  0x19   :  { %v121_v50 = vsel %vm120_vm3, %v118_v45, %v119_v48  ;;  %421 = vmatprep.subr.mxu0 %v150_v2 }
  0x1a   :  { %v123_v52 = vsel %vm122_vm5, %v118_v45, %v121_v50  ;;  %422 = vmatpush3.msra.mxu0 %v134_v3  ;;  %p466_p4 = pnand %p465_p3, %p459_p0 }
  0x1b   :  { %v125_v54 = vsel %vm124_vm6, %v118_v45, %v123_v52  ;;  %423 = vmatprep.subr.mxu0 %v149_v4 }
  0x1c   :  { %128 = vst.msk [vmem:[#allocation3 + $0x2] sm:$0x3] %vm127_vm7, %v125_v54  ;;  %424 = vmatpush3.msra.mxu0 %v133_v5 }
  0x1d   :  { %425 = vmatprep.subr.mxu0 %v148_v6 }
  0x1e   :  { %426 = vmatpush3.msra.mxu0 %v132_v7 }
  0x1f   :  { %427 = vmatprep.subr.mxu0 %v147_v8 }
  0x20   :  { %428 = vmatpush3.msra.mxu0 %v131_v9 }
  0x21   :  { %429 = vmatprep.subr.mxu0 %v146_v10 }
  0x22   :  { %430 = vmatpush3.msra.mxu0 %v130_v11 }
  0x92   :  { %v46_v13 = vpop.xlane.xlu0 %45 }
  0x93   :  { %v59_v16 = vrot.slane %v46_v13, %v58_v14 }
  0x96   :  { %v51_v15 = vpop.xlane.xlu0 %50 }
  0x97   :  { %v63_v18 = vrot.slane %v51_v15, %v58_v14 }
  0x99   :  { %v65_v19 = vsel %vm64_vm4, %v63_v18, %v59_v16 }
  0x9a   :  { %v67_v20 = vadd.f32 %v65_v19, %v30_v17 }
  0x9c   :  { %69 = vst.msk [vmem:[#allocation2] sm:$0x3] %vm28_vm2, %v67_v20 }
  0xa3   :  { %v73_v21 = vld [vmem:[#allocation2] sm:$0x3] }
  0xa4   :  { %v74_v22 = vmul.f32 0.00390625, %v73_v21 }
  0xa6   :  { %97 = vst.msk [vmem:[#allocation3] sm:$0x3] %vm28_vm2, %v74_v22 }
  0xad   :  { %v388_v23 = vld.sshfl [vmem:[#allocation3] sm:$0x33 pattern:$0x76325410] }
  0xae   :  { %v177_v25 = vcombine.high %v388_v23, %v388_v23 }
  0xb0   :  { %244 = vmatprep.mubr.f32.mxu0 %v177_v25 }
  0xb1   :  { %245 = vmatmul.mubr.f32.vlgmr.msra.gmra.mxu0 %v388_v23 }
 0x171   :  { %v431_v29 = vpop.f32.mrf.mxu0 }
 0x173   :  { %v432_v31 = vpop.f32.mrf.mxu0 }
 0x174   :  { %v433_v32 = vadd.f32 %v432_v31, %v431_v29 }
 0x176   :  { %v247_v33 = vadd.f32 %v433_v32, %v387_v30 }
 0x178   :  { %v250_v34 = vmax.f32 %v247_v33, 0.0 }
 0x17a   :  { %448 = vmatmul.mubr.msk.f32.vlgmr.msra.gmra.mxu1 %vm79_vm1, %v250_v34 }
 0x23a   :  { %v331_v36 = vpop.f32.mrf.mxu1 }
 0x23b   :  { %v332_v37 = vadd.f32 %v389_v35, %v331_v36 }
 0x23c   :  { %v449_v38 = vpop.f32.mrf.mxu1 }
 0x23d   :  { %v336_v39 = vsel %vm335_vm9, %v332_v37, -inf }
 0x23e   :  { %337 = vmax.xlane.f32.xlu1 %v336_v39 }
 0x2c7   :  { %v338_v40 = vpop.xlane.xlu1 %337 }
 0x2c8   :  { %v339_v41 = vsub.f32 %v332_v37, %v338_v40  ;;  %vm350_vm10 = vcmp.eq.f32.partialorder %v332_v37, %v338_v40 }
 0x2c9   :  { %v351_v42 = vsel %vm350_vm10, %v55_v12, 2 }
 0x2ca   :  { %v340_v43 = vmul.f32 1.442695, %v339_v41  ;;  %v352_v44 = vsel %vm335_vm9, %v351_v42, 2147483647 }
 0x2cb   :  { %v354_v45 = vshra.s32 %v352_v44, 16  ;;  %v353_v49 = vand.u32 65535, %v352_v44 }
 0x2cc   :  { %454 = vpow2.f32 %v340_v43 }
 0x2cd   :  { %v356_v46 = vcvt.s32.f32 %v354_v45  ;;  %v355_v51 = vcvt.s32.f32 %v353_v49 }
 0x2cf   :  { %357 = vmin.xlane.f32.xlu0 %v356_v46 }
 0x2d9   :  { %v455_v47 = vpop.eup %454 }
 0x2da   :  { %v342_v48 = vsel %vm335_vm9, %v455_v47, 0.0 }
 0x2db   :  { %343 = vadd.xlane.f32.xlu1 %v342_v48 }
 0x358   :  { %v358_v50 = vpop.xlane.xlu0 %357 }
 0x359   :  { %vm359_vm11 = vcmp.eq.f32.partialorder %v356_v46, %v358_v50  ;;  %v364_v57 = vcvt.f32.s32 %v358_v50 }
 0x35a   :  { %v360_v52 = vsel %vm359_vm11, %v355_v51, inf }
 0x35b   :  { %361 = vmin.xlane.f32.xlu1 %v360_v52  ;;  %v365_v59 = vshll.u32 %v364_v57, 16 }
 0x364   :  { %v344_v53 = vpop.xlane.xlu1 %343 }
 0x365   :  { %456 = vrcp.f32 %v344_v53 }
 0x372   :  { %v457_v54 = vpop.eup %456 }
 0x373   :  { %v346_v55 = vmul.f32 %v457_v54, %v455_v47 }
 0x375   :  { %v347_v56 = vsel %vm335_vm9, %v346_v55, -inf  ;;  %369 = vst.msk [vmem:[#allocation4] sm:$0x3] %vm335_vm9, %v346_v55 }
 0x376   :  { %348 = vmax.xlane.f32.xlu0 %v347_v56 }
 0x3e4   :  { %v362_v58 = vpop.xlane.xlu1 %361 }
 0x3e5   :  { %v363_v60 = vcvt.f32.s32 %v362_v58 }
 0x3e7   :  { %v366_v61 = vadd.s32 %v365_v59, %v363_v60 }
 0x3e9   :  { %v367_v62 = vcvt.s32.f32 %v366_v61 }
 0x3eb   :  { %372 = vst.msk [vmem:[#allocation4 + $0x4] sm:$0x3] %vm370_vm12, %v367_v62 }
 0x3ff   :  { %v349_v63 = vpop.xlane.xlu0 %348 }
 0x400   :  { %371 = vst.msk [vmem:[#allocation4 + $0x2] sm:$0x3] %vm370_vm12, %v349_v63 }
 0x401   :  { %469 = shalt.err (!%p466_p4)
}
 0x402   :  { %382 = dma.vmem_to_hbm [thread:$0]  %s380_s4, 96, %s679_s6, [#allocation5]  }
 0x403   :  { %478 = dma.done.wait [#allocation5], 96  }
 0x404   :  { %479 = vsyncadd [#allocation5], 4294967200 }
 0x405   :  { %386 = vsyncpa [#allocation5], 1 }

</bundles_post_ra>
